<compile_context>
chip_gen: v7x
topology: tpu7x:2x2x1
jax: 0.10.0
libtpu: 0.0.40
codegen_flags: <defaults>
</compile_context>

<pallas_src>
import jax
import jax.numpy as jnp
from jax.experimental import pallas as pl
from jax.experimental.pallas import tpu as pltpu

BN_EPS = 1e-5
HIDDEN = 512
OUT_PAD = 128  # lane-dense padded output width (3*z zero-padded up to 128 lanes)


def _bn_elu(h, gamma, beta):
    """Training-mode BatchNorm1d fused to scale/shift, then ELU(alpha=1).

    Kept in f32 (v5e has no bf16 VPU/EUP); rsqrt/exp go to the EUP slot.
    """
    mu = jnp.mean(h, axis=0, keepdims=True)
    c = h - mu
    var = jnp.mean(c * c, axis=0, keepdims=True)          # biased batch variance
    s = gamma * jax.lax.rsqrt(var + BN_EPS)                # per-feature scale
    y = c * s + beta                                       # one mul + one add / elem
    return jnp.where(y > 0, y, jnp.exp(y) - 1.0)           # ELU(alpha=1)


def encoder_kernel(x_ref, w1_ref, w2_ref, w3_ref, vec_ref, out_ref):
    f32 = jnp.float32
    bf16 = jnp.bfloat16

    x = x_ref[...]                                         # (B, ze) f32

    # packed per-feature parameter slab: rows 0..3 = g1, be1, g2, be2; row 4 = b3 (padded)
    g1, be1 = vec_ref[0:1, :], vec_ref[1:2, :]
    g2, be2 = vec_ref[2:3, :], vec_ref[3:4, :]
    b3 = vec_ref[4:5, 0:OUT_PAD]                           # (1, OUT_PAD)

    # linear1 (bias is a mathematical no-op before training-mode BN) -> bn1 -> ELU
    h = jnp.dot(x.astype(bf16), w1_ref[...], preferred_element_type=f32)
    h = _bn_elu(h, g1, be1)

    # linear2 -> bn2 -> ELU
    h = jnp.dot(h.astype(bf16), w2_ref[...], preferred_element_type=f32)
    h = _bn_elu(h, g2, be2)

    # linear3 into a lane-dense padded (B, OUT_PAD) output
    out_ref[...] = (
        jnp.dot(h.astype(bf16), w3_ref[...], preferred_element_type=f32) + b3
    )


def encoder_forward(x, kparams, ze, z):
    """Runs the Encoder forward pass; returns (w1, w2, w3) each of shape (B, z)."""
    x2d = x.reshape(-1, ze).astype(jnp.float32)
    B = x2d.shape[0]
    n_out = 3 * z
    assert n_out <= OUT_PAD, "pad width must cover 3*z"

    operands = (x2d, kparams["w1"], kparams["w2"], kparams["w3"], kparams["vec"])

    vmem = lambda: pl.BlockSpec(memory_space=pltpu.MemorySpace.VMEM)
    out = pl.pallas_call(
        encoder_kernel,
        out_shape=jax.ShapeDtypeStruct((B, OUT_PAD), jnp.float32),
        in_specs=[vmem() for _ in operands],
        out_specs=vmem(),
    )(*operands)

    out = out[:, :n_out].reshape(B, 3, z)
    return out[:, 0], out[:, 1], out[:, 2]


def init_params(key, ze, z):
    """Deterministic f32 parameters (PyTorch-style uniform fan-in bounds)."""
    ks = jax.random.split(key, 6)

    def linear(kw, kb, fan_in, fan_out):
        bound = 1.0 / jnp.sqrt(fan_in)
        w = jax.random.uniform(kw, (fan_in, fan_out), jnp.float32, -bound, bound)
        b = jax.random.uniform(kb, (fan_out,), jnp.float32, -bound, bound)
        return w, b

    w1, b1 = linear(ks[0], ks[1], ze, HIDDEN)
    w2, b2 = linear(ks[2], ks[3], HIDDEN, HIDDEN)
    w3, b3 = linear(ks[4], ks[5], HIDDEN, 3 * z)

    ones = jnp.ones((HIDDEN,), jnp.float32)
    zeros = jnp.zeros((HIDDEN,), jnp.float32)
    return {
        "w1": w1, "b1": b1, "g1": ones, "be1": zeros,
        "w2": w2, "b2": b2, "g2": ones, "be2": zeros,
        "w3": w3, "b3": b3,
    }


def pack_params(p, z):
    """Kernel-ready params: bf16 weights, padded w3, one f32 per-feature slab."""
    n_out = 3 * z
    w3_pad = jnp.zeros((HIDDEN, OUT_PAD), jnp.float32).at[:, :n_out].set(p["w3"])

    vec = jnp.zeros((8, HIDDEN), jnp.float32)
    vec = vec.at[0, :].set(p["g1"]).at[1, :].set(p["be1"])
    vec = vec.at[2, :].set(p["g2"]).at[3, :].set(p["be2"])
    vec = vec.at[4, :n_out].set(p["b3"])                  # rest of row 4 stays 0

    return {
        "w1": p["w1"].astype(jnp.bfloat16),
        "w2": p["w2"].astype(jnp.bfloat16),
        "w3": w3_pad.astype(jnp.bfloat16),
        "vec": vec,
    }


def reference_forward(x, p, ze, z):
    """Pure-JAX reference of the PyTorch forward (training-mode BN, biases kept).

    Dots mirror the kernel's bf16-input / f32-accumulate MXU boundary so the
    comparison isolates kernel correctness rather than bf16 quantization.
    """
    x = x.reshape(-1, ze).astype(jnp.float32)

    def bn(h, g, b):
        mu = jnp.mean(h, axis=0, keepdims=True)
        var = jnp.mean((h - mu) ** 2, axis=0, keepdims=True)
        return (h - mu) * jax.lax.rsqrt(var + BN_EPS) * g + b

    def elu(h):
        return jnp.where(h > 0, h, jnp.exp(h) - 1.0)

    def dot_bf16(a, w):
        return jnp.dot(a.astype(jnp.bfloat16), w.astype(jnp.bfloat16),
                       preferred_element_type=jnp.float32)

    h = elu(bn(dot_bf16(x, p["w1"]) + p["b1"], p["g1"], p["be1"]))
    h = elu(bn(dot_bf16(h, p["w2"]) + p["b2"], p["g2"], p["be2"]))
    out = (dot_bf16(h, p["w3"]) + p["b3"]).reshape(-1, 3, z)
    return out[:, 0], out[:, 1], out[:, 2]


if __name__ == "__main__":
    ze = 32   # args.ze (input latent dim)
    z = 16    # args.z  (output latent dim per head) -> 3*z = 48 outputs
    B = 8     # batch size (sublane-aligned)

    key = jax.random.PRNGKey(0)
    kx, kp = jax.random.split(key)
    x = jax.random.normal(kx, (B, ze), jnp.float32)

    params = init_params(kp, ze, z)
    kparams = pack_params(params, z)

    w1, w2, w3 = encoder_forward(x, kparams, ze, z)
    jax.block_until_ready((w1, w2, w3))

    r1, r2, r3 = reference_forward(x, params, ze, z)
    assert w1.shape == (B, z) and w2.shape == (B, z) and w3.shape == (B, z)
    # b1/b2 are omitted in the kernel (cancelled by training-mode BN); tolerance
    # covers only fp rounding / bf16 re-rounding, not any semantic difference.
    assert jnp.allclose(w1, r1, atol=2e-2, rtol=2e-2)
    assert jnp.allclose(w2, r2, atol=2e-2, rtol=2e-2)
    assert jnp.allclose(w3, r3, atol=2e-2, rtol=2e-2)

    print("KERNEL_OK")
</pallas_src>

<mosaic_0001>
module attributes {stable_mosaic.version = 11 : i64} {
  func.func @encoder_kernel(%arg0: memref<8x32xf32, #tpu.memory_space<vmem>>, %arg1: memref<32x512xbf16, #tpu.memory_space<vmem>>, %arg2: memref<512x512xbf16, #tpu.memory_space<vmem>>, %arg3: memref<512x128xbf16, #tpu.memory_space<vmem>>, %arg4: memref<8x512xf32, #tpu.memory_space<vmem>>, %arg5: memref<8x128xf32, #tpu.memory_space<vmem>>) attributes {dimension_semantics = [], scalar_prefetch = 0 : i64, scratch_operands = 0 : i64, tpu.core_type = #tpu.core_type<tc>} {
    %c0 = arith.constant 0 : index
    %c0_0 = arith.constant 0 : index
    %0 = vector.load %arg0[%c0, %c0_0] : memref<8x32xf32, #tpu.memory_space<vmem>>, vector<8x32xf32>
    %c0_1 = arith.constant 0 : index
    %c0_2 = arith.constant 0 : index
    %1 = vector.load %arg4[%c0_1, %c0_2] : memref<8x512xf32, #tpu.memory_space<vmem>>, vector<1x512xf32>
    %c1 = arith.constant 1 : index
    %c0_3 = arith.constant 0 : index
    %2 = vector.load %arg4[%c1, %c0_3] : memref<8x512xf32, #tpu.memory_space<vmem>>, vector<1x512xf32>
    %c2 = arith.constant 2 : index
    %c0_4 = arith.constant 0 : index
    %3 = vector.load %arg4[%c2, %c0_4] : memref<8x512xf32, #tpu.memory_space<vmem>>, vector<1x512xf32>
    %c3 = arith.constant 3 : index
    %c0_5 = arith.constant 0 : index
    %4 = vector.load %arg4[%c3, %c0_5] : memref<8x512xf32, #tpu.memory_space<vmem>>, vector<1x512xf32>
    %c4 = arith.constant 4 : index
    %c0_6 = arith.constant 0 : index
    %5 = vector.load %arg4[%c4, %c0_6] : memref<8x512xf32, #tpu.memory_space<vmem>>, vector<1x128xf32>
    %6 = arith.truncf %0 : vector<8x32xf32> to vector<8x32xbf16>
    %c0_7 = arith.constant 0 : index
    %c0_8 = arith.constant 0 : index
    %7 = vector.load %arg1[%c0_7, %c0_8] : memref<32x512xbf16, #tpu.memory_space<vmem>>, vector<32x512xbf16>
    %cst = arith.constant dense<0.000000e+00> : vector<8x512xf32>
    %8 = tpu.matmul %6, %7, %cst {dimension_numbers = #tpu.dot_dimension_numbers<[1], [0], [0], [1], [0, 0, 1, 1], [], []>} : vector<8x32xbf16>, vector<32x512xbf16>, vector<8x512xf32> -> vector<8x512xf32>
    %cst_9 = arith.constant dense<0.000000e+00> : vector<512xf32>
    %9 = vector.multi_reduction <add>, %8, %cst_9 [0] : vector<8x512xf32> to vector<512xf32>
    %10 = vector.shape_cast %9 : vector<512xf32> to vector<1x512xf32>
    %cst_10 = arith.constant 8.000000e+00 : f32
    %11 = vector.broadcast %cst_10 : f32 to vector<1x512xf32>
    %12 = arith.divf %10, %11 : vector<1x512xf32>
    %13 = vector.broadcast %12 : vector<1x512xf32> to vector<8x512xf32>
    %14 = arith.subf %8, %13 : vector<8x512xf32>
    %15 = arith.mulf %14, %14 : vector<8x512xf32>
    %cst_11 = arith.constant dense<0.000000e+00> : vector<512xf32>
    %16 = vector.multi_reduction <add>, %15, %cst_11 [0] : vector<8x512xf32> to vector<512xf32>
    %17 = vector.shape_cast %16 : vector<512xf32> to vector<1x512xf32>
    %cst_12 = arith.constant 8.000000e+00 : f32
    %18 = vector.broadcast %cst_12 : f32 to vector<1x512xf32>
    %19 = arith.divf %17, %18 : vector<1x512xf32>
    %cst_13 = arith.constant 9.99999974E-6 : f32
    %20 = vector.broadcast %cst_13 : f32 to vector<1x512xf32>
    %21 = arith.addf %19, %20 : vector<1x512xf32>
    %22 = math.rsqrt %21 : vector<1x512xf32>
    %23 = arith.mulf %1, %22 : vector<1x512xf32>
    %24 = vector.broadcast %23 : vector<1x512xf32> to vector<8x512xf32>
    %25 = arith.mulf %14, %24 : vector<8x512xf32>
    %26 = vector.broadcast %2 : vector<1x512xf32> to vector<8x512xf32>
    %27 = arith.addf %25, %26 : vector<8x512xf32>
    %cst_14 = arith.constant 0.000000e+00 : f32
    %28 = vector.broadcast %cst_14 : f32 to vector<8x512xf32>
    %29 = arith.cmpf ogt, %27, %28 : vector<8x512xf32>
    %30 = math.exp %27 : vector<8x512xf32>
    %cst_15 = arith.constant 1.000000e+00 : f32
    %31 = vector.broadcast %cst_15 : f32 to vector<8x512xf32>
    %32 = arith.subf %30, %31 : vector<8x512xf32>
    %33 = arith.select %29, %27, %32 : vector<8x512xi1>, vector<8x512xf32>
    %34 = arith.truncf %33 : vector<8x512xf32> to vector<8x512xbf16>
    %c0_16 = arith.constant 0 : index
    %c0_17 = arith.constant 0 : index
    %35 = vector.load %arg2[%c0_16, %c0_17] : memref<512x512xbf16, #tpu.memory_space<vmem>>, vector<512x512xbf16>
    %cst_18 = arith.constant dense<0.000000e+00> : vector<8x512xf32>
    %36 = tpu.matmul %34, %35, %cst_18 {dimension_numbers = #tpu.dot_dimension_numbers<[1], [0], [0], [1], [0, 0, 1, 1], [], []>} : vector<8x512xbf16>, vector<512x512xbf16>, vector<8x512xf32> -> vector<8x512xf32>
    %cst_19 = arith.constant dense<0.000000e+00> : vector<512xf32>
    %37 = vector.multi_reduction <add>, %36, %cst_19 [0] : vector<8x512xf32> to vector<512xf32>
    %38 = vector.shape_cast %37 : vector<512xf32> to vector<1x512xf32>
    %cst_20 = arith.constant 8.000000e+00 : f32
    %39 = vector.broadcast %cst_20 : f32 to vector<1x512xf32>
    %40 = arith.divf %38, %39 : vector<1x512xf32>
    %41 = vector.broadcast %40 : vector<1x512xf32> to vector<8x512xf32>
    %42 = arith.subf %36, %41 : vector<8x512xf32>
    %43 = arith.mulf %42, %42 : vector<8x512xf32>
    %cst_21 = arith.constant dense<0.000000e+00> : vector<512xf32>
    %44 = vector.multi_reduction <add>, %43, %cst_21 [0] : vector<8x512xf32> to vector<512xf32>
    %45 = vector.shape_cast %44 : vector<512xf32> to vector<1x512xf32>
    %cst_22 = arith.constant 8.000000e+00 : f32
    %46 = vector.broadcast %cst_22 : f32 to vector<1x512xf32>
    %47 = arith.divf %45, %46 : vector<1x512xf32>
    %cst_23 = arith.constant 9.99999974E-6 : f32
    %48 = vector.broadcast %cst_23 : f32 to vector<1x512xf32>
    %49 = arith.addf %47, %48 : vector<1x512xf32>
    %50 = math.rsqrt %49 : vector<1x512xf32>
    %51 = arith.mulf %3, %50 : vector<1x512xf32>
    %52 = vector.broadcast %51 : vector<1x512xf32> to vector<8x512xf32>
    %53 = arith.mulf %42, %52 : vector<8x512xf32>
    %54 = vector.broadcast %4 : vector<1x512xf32> to vector<8x512xf32>
    %55 = arith.addf %53, %54 : vector<8x512xf32>
    %cst_24 = arith.constant 0.000000e+00 : f32
    %56 = vector.broadcast %cst_24 : f32 to vector<8x512xf32>
    %57 = arith.cmpf ogt, %55, %56 : vector<8x512xf32>
    %58 = math.exp %55 : vector<8x512xf32>
    %cst_25 = arith.constant 1.000000e+00 : f32
    %59 = vector.broadcast %cst_25 : f32 to vector<8x512xf32>
    %60 = arith.subf %58, %59 : vector<8x512xf32>
    %61 = arith.select %57, %55, %60 : vector<8x512xi1>, vector<8x512xf32>
    %62 = arith.truncf %61 : vector<8x512xf32> to vector<8x512xbf16>
    %c0_26 = arith.constant 0 : index
    %c0_27 = arith.constant 0 : index
    %63 = vector.load %arg3[%c0_26, %c0_27] : memref<512x128xbf16, #tpu.memory_space<vmem>>, vector<512x128xbf16>
    %cst_28 = arith.constant dense<0.000000e+00> : vector<8x128xf32>
    %64 = tpu.matmul %62, %63, %cst_28 {dimension_numbers = #tpu.dot_dimension_numbers<[1], [0], [0], [1], [0, 0, 1, 1], [], []>} : vector<8x512xbf16>, vector<512x128xbf16>, vector<8x128xf32> -> vector<8x128xf32>
    %65 = vector.broadcast %5 : vector<1x128xf32> to vector<8x128xf32>
    %66 = arith.addf %64, %65 : vector<8x128xf32>
    %c0_29 = arith.constant 0 : index
    %c0_30 = arith.constant 0 : index
    %67 = vector.load %arg5[%c0_29, %c0_30] : memref<8x128xf32, #tpu.memory_space<vmem>>, vector<8x128xf32>
    tpu.vector_store %arg5[%c0_29, %c0_30], %66 {strides = array<i32>} : memref<8x128xf32, #tpu.memory_space<vmem>>, vector<8x128xf32>,
    return
  }
}

</mosaic_0001>

<bundles_post_ra>
// kernel: tpu_custom_call.1
= control target key start
LH: loop header
LB: loop body
LE: loop exit
PB: predicated region body
PF: predicated region fallthrough
CT: control target
= control target key end

     0   :  { %10 = vsyncpa [#allocation3], 0  ;;  %s2718_s0 = inlined_call_operand.hbm [shape: f32[8,32], index: 0, kind: input, shape index: {}]   ;;  %s2719_s1 = inlined_call_operand.hbm [shape: bf16[32,512], index: 1, kind: input, shape index: {}]   ;;  %s2720_s2 = inlined_call_operand.hbm [shape: bf16[512,512], index: 2, kind: input, shape index: {}]   ;;  %s2721_s3 = inlined_call_operand.hbm [shape: bf16[512,128], index: 3, kind: input, shape index: {}]   ;;  %s2722_s4 = inlined_call_operand.hbm [shape: f32[8,512], index: 4, kind: input, shape index: {}]   ;;  %s2723_s5 = inlined_call_operand.hbm [shape: f32[8,128], index: 5, kind: output, shape index: {}]  }
   0x1   :  { %11 = vsyncpa [#allocation6], 0 }
   0x2   :  { %12 = vsyncpa [#allocation9], 0 }
   0x3   :  { %13 = vsyncpa [#allocation4], 0  ;;  %s2519_s18 = smov [#allocation5]   ;;  %s2379_s22 = scalar_lea.hbm %s2719_s1, 1024 }
   0x4   :  { %s29_s19 = sshll.u32 %s2519_s18, 4  ;;  %p2380_p0 = scmp.ne.s32.totalorder %s2719_s1, %s2379_s22  ;;  %s30_s19 = int_to_ptr.vmem [resolvable:$true] %s29_s19 }
   0x5   :  { %p2383_p1 = scmp.lt.u32.totalorder %s2379_s22, %s2719_s1 }
   0x7   :  { %p2385_p2 = pnand %p2383_p1, %p2380_p0 }
   0x9   :  { %2388 = shalt.err (!%p2385_p2)
}
   0xa   :  { %s2389_s27 = scalar_lea.vmem %s30_s19, 1024  ;;  %p2394_p4 = scmp.lt.s32.totalorder %s30_s19, %s30_s19 }
   0xb   :  { %p2390_p3 = scmp.ne.s32.totalorder %s30_s19, %s2389_s27  ;;  %p2395_p5 = scmp.lt.s32.totalorder %s2389_s27, %s2389_s27 }
   0xd   :  { %p2396_p6 = por %p2395_p5, %p2394_p4 }
   0xf   :  { %p2397_p7 = pnand %p2396_p6, %p2390_p3 }
  0x11   :  { %2400 = shalt.err (!%p2397_p7)
}
  0x12   :  { %s2520_s28 = smov 256   ;;  %s2521_s29 = smov 16  }
  0x13   :  { %35 = dma.hbm_to_vmem [thread:$0]  %s2719_s1, 1024, %s30_s19, [#allocation6], %s2520_s28, %s2520_s28, %s2521_s29  }
  0x14   :  { %s2522_s7 = smov [#allocation8]   ;;  %s2401_s11 = scalar_lea.hbm %s2721_s3, 4096 }
  0x15   :  { %s53_s8 = sshll.u32 %s2522_s7, 4  ;;  %p2402_p8 = scmp.ne.s32.totalorder %s2721_s3, %s2401_s11  ;;  %s54_s8 = int_to_ptr.vmem [resolvable:$true] %s53_s8 }
  0x16   :  { %p2405_p9 = scmp.lt.u32.totalorder %s2401_s11, %s2721_s3 }
  0x18   :  { %p2407_p10 = pnand %p2405_p9, %p2402_p8 }
  0x1a   :  { %2410 = shalt.err (!%p2407_p10)
}
  0x1b   :  { %s2411_s16 = scalar_lea.vmem %s54_s8, 4096  ;;  %p2416_p12 = scmp.lt.s32.totalorder %s54_s8, %s54_s8 }
  0x1c   :  { %p2412_p11 = scmp.ne.s32.totalorder %s54_s8, %s2411_s16  ;;  %p2417_p13 = scmp.lt.s32.totalorder %s2411_s16, %s2411_s16 }
  0x1e   :  { %p2418_p0 = por %p2417_p13, %p2416_p12 }
  0x20   :  { %p2419_p1 = pnand %p2418_p0, %p2412_p11 }
  0x22   :  { %2422 = shalt.err (!%p2419_p1)
}
  0x23   :  { %s2523_s1 = smov 64   ;;  %s2524_s17 = smov 4  }
  0x24   :  { %59 = dma.hbm_to_vmem [thread:$0]  %s2721_s3, 4096, %s54_s8, [#allocation9], %s2523_s1, %s2523_s1, %s2524_s17  }
  0x25   :  { %s2525_s20 = smov [#allocation2]   ;;  %s2526_s22 = smov [#allocation7]  }
  0x26   :  { %s20_s21 = sshll.u32 %s2525_s20, 4  ;;  %s41_s23 = sshll.u32 %s2526_s22, 4  ;;  %s21_s21 = int_to_ptr.vmem [resolvable:$true] %s20_s21  ;;  %s2588_s23 = int_to_ptr.vmem [resolvable:$true] %s41_s23 }
  0x27   :  { %s2423_s26 = scalar_lea.hbm %s2718_s0, 128 }
  0x28   :  { %p2424_p2 = scmp.ne.s32.totalorder %s2718_s0, %s2423_s26  ;;  %p2427_p3 = scmp.lt.u32.totalorder %s2423_s26, %s2718_s0 }
  0x2a   :  { %p2429_p4 = pnand %p2427_p3, %p2424_p2 }
  0x2c   :  { %2432 = shalt.err (!%p2429_p4)
}
  0x2d   :  { %s2433_s3 = scalar_lea.vmem %s21_s21, 128  ;;  %p2438_p6 = scmp.lt.s32.totalorder %s21_s21, %s21_s21 }
  0x2e   :  { %p2434_p5 = scmp.ne.s32.totalorder %s21_s21, %s2433_s3  ;;  %p2439_p7 = scmp.lt.s32.totalorder %s2433_s3, %s2433_s3 }
  0x30   :  { %p2440_p8 = por %p2439_p7, %p2438_p6 }
  0x32   :  { %p2441_p9 = pnand %p2440_p8, %p2434_p5 }
  0x34   :  { %2444 = shalt.err (!%p2441_p9)
}
  0x35   :  { %23 = dma.hbm_to_vmem [thread:$0]  %s2718_s0, 128, %s21_s21, [#allocation3]  }
  0x36   :  { %s2445_s12 = scalar_lea.hbm %s2720_s2, 16384 }
  0x37   :  { %p2446_p10 = scmp.ne.s32.totalorder %s2720_s2, %s2445_s12  ;;  %p2449_p11 = scmp.lt.u32.totalorder %s2445_s12, %s2720_s2 }
  0x39   :  { %p2451_p12 = pnand %p2449_p11, %p2446_p10 }
  0x3b   :  { %2454 = shalt.err (!%p2451_p12)
}
  0x3c   :  { %s2455_s1 = scalar_lea.vmem %s2588_s23, 16384  ;;  %p2460_p0 = scmp.lt.s32.totalorder %s2588_s23, %s2588_s23 }
  0x3d   :  { %p2456_p13 = scmp.ne.s32.totalorder %s2588_s23, %s2455_s1  ;;  %p2461_p1 = scmp.lt.s32.totalorder %s2455_s1, %s2455_s1 }
  0x3f   :  { %p2462_p2 = por %p2461_p1, %p2460_p0 }
  0x41   :  { %p2463_p3 = pnand %p2462_p2, %p2456_p13 }
  0x43   :  { %2466 = shalt.err (!%p2463_p3)
}
  0x44   :  { %47 = dma.hbm_to_vmem [thread:$0]  %s2720_s2, 16384, %s2588_s23, [#allocation6], %s2520_s28, %s2520_s28, %s2521_s29  }
  0x45   :  { %s2527_s18 = smov [#allocation10]   ;;  %s2467_s22 = scalar_lea.hbm %s2722_s4, 512 }
  0x46   :  { %s66_s19 = sshll.u32 %s2527_s18, 4  ;;  %p2468_p4 = scmp.ne.s32.totalorder %s2722_s4, %s2467_s22  ;;  %s67_s19 = int_to_ptr.vmem [resolvable:$true] %s66_s19 }
  0x47   :  { %p2471_p5 = scmp.lt.u32.totalorder %s2467_s22, %s2722_s4 }
  0x49   :  { %p2473_p6 = pnand %p2471_p5, %p2468_p4 }
  0x4b   :  { %2476 = shalt.err (!%p2473_p6)
}
  0x4c   :  { %s2477_s30 = scalar_lea.vmem %s67_s19, 512  ;;  %p2482_p8 = scmp.lt.s32.totalorder %s67_s19, %s67_s19 }
  0x4d   :  { %p2478_p7 = scmp.ne.s32.totalorder %s67_s19, %s2477_s30  ;;  %p2483_p9 = scmp.lt.s32.totalorder %s2477_s30, %s2477_s30 }
  0x4f   :  { %p2484_p10 = por %p2483_p9, %p2482_p8 }
  0x51   :  { %p2485_p11 = pnand %p2484_p10, %p2478_p7 }
  0x53   :  { %2488 = shalt.err (!%p2485_p11)
}
  0x54   :  { %69 = dma.hbm_to_vmem [thread:$0]  %s2722_s4, 512, %s67_s19, [#allocation9]  }
  0x55   :  { %2511 = dma.done.wait [#allocation3], 128  }
  0x56   :  { %2512 = vsyncadd [#allocation3], 4294967168 }
  0x57   :  { %2513 = dma.done.wait [#allocation6], 17408  }
  0x58   :  { %2514 = vsyncadd [#allocation6], 4294949888 }
  0x59   :  { %2515 = dma.done.wait [#allocation9], 4608  }
  0x5a   :  { %2516 = vsyncadd [#allocation9], 4294962688  ;;  %v2528_v0 = vmov 0   ;;  %v2111_v1 = vld [vmem:[#allocation5 + $0x4] ss:$16 sps:$4 sm:$0xff]   ;;  %v86_v9 = vld [vmem:[#allocation2] sm:$0xff] }
  0x5b   :  { %180 = vmatprep.mubr.bf16.mxu0 %v2528_v0  ;;  %221 = vmatprep.mubr.bf16.mxu1 %v2528_v0  ;;  %v2113_v2 = vld [vmem:[#allocation5 + $0xc] ss:$16 sps:$4 sm:$0xff]   ;;  %v2115_v3 = vld [vmem:[#allocation5] ss:$16 sps:$4 sm:$0xff]   ;;  %v2116_v4 = vld [vmem:[#allocation5 + $0x8] ss:$16 sps:$4 sm:$0xff]   ;;  %v95_v10 = vpack.c.bf16 %v86_v9, %v86_v9 }
  0x5c   :  { %148 = vmatprep.subr.bf16.mxu0 %v2111_v1  ;;  %189 = vmatprep.subr.bf16.mxu1 %v2113_v2  ;;  %v2117_v5 = vld [vmem:[#allocation5 + $0x24] ss:$16 sps:$4 sm:$0xff]   ;;  %v2119_v6 = vld [vmem:[#allocation5 + $0x2c] ss:$16 sps:$4 sm:$0xff]   ;;  %v2121_v7 = vld [vmem:[#allocation5 + $0x20] ss:$16 sps:$4 sm:$0xff]  }
  0x5d   :  { %149 = vmatpush1.bf16.msra.mxu0 %v2115_v3  ;;  %190 = vmatpush1.bf16.msra.mxu1 %v2116_v4  ;;  %v2122_v8 = vld [vmem:[#allocation5 + $0x28] ss:$16 sps:$4 sm:$0xff]   ;;  %vm144_vm0 = vcmask 261120   ;;  %v2125_v11 = vld [vmem:[#allocation7 + $0x4] ss:$16 sps:$4 sm:$0xff]   ;;  %s2530_s4 = smov [#allocation11]  }
  0x5e   :  { %150 = vmatprep.subr.bf16.mxu0 %v2117_v5  ;;  %191 = vmatprep.subr.bf16.mxu1 %v2119_v6  ;;  %v2128_v12 = vld [vmem:[#allocation7 + $0xc] ss:$16 sps:$4 sm:$0xff]   ;;  %v2123_v13 = vld [vmem:[#allocation7] ss:$16 sps:$4 sm:$0xff]   ;;  %v2126_v14 = vld [vmem:[#allocation7 + $0x8] ss:$16 sps:$4 sm:$0xff]  }
  0x5f   :  { %v2131_v15 = vld [vmem:[#allocation7 + $0x24] ss:$16 sps:$4 sm:$0xff]   ;;  %v2134_v16 = vld [vmem:[#allocation7 + $0x2c] ss:$16 sps:$4 sm:$0xff]   ;;  %v2129_v17 = vld [vmem:[#allocation7 + $0x20] ss:$16 sps:$4 sm:$0xff]  }
  0x60   :  { %v2132_v18 = vld [vmem:[#allocation7 + $0x28] ss:$16 sps:$4 sm:$0xff]   ;;  %v2137_v19 = vld [vmem:[#allocation7 + $0x44] ss:$16 sps:$4 sm:$0xff]   ;;  %v2140_v20 = vld [vmem:[#allocation7 + $0x4c] ss:$16 sps:$4 sm:$0xff]  }
  0x61   :  { %151 = vmatpush1.bf16.msra.mxu0 %v2121_v7  ;;  %192 = vmatpush1.bf16.msra.mxu1 %v2122_v8  ;;  %v2135_v21 = vld [vmem:[#allocation7 + $0x40] ss:$16 sps:$4 sm:$0xff]   ;;  %v2138_v22 = vld [vmem:[#allocation7 + $0x48] ss:$16 sps:$4 sm:$0xff]   ;;  %v2143_v23 = vld [vmem:[#allocation7 + $0x64] ss:$16 sps:$4 sm:$0xff]  }
  0x62   :  { %1175 = vmatprep.subr.bf16.mxu0 %v2125_v11  ;;  %1257 = vmatprep.subr.bf16.mxu1 %v2128_v12  ;;  %v2146_v24 = vld [vmem:[#allocation7 + $0x6c] ss:$16 sps:$4 sm:$0xff]   ;;  %v2141_v25 = vld [vmem:[#allocation7 + $0x60] ss:$16 sps:$4 sm:$0xff]   ;;  %v2144_v26 = vld [vmem:[#allocation7 + $0x68] ss:$16 sps:$4 sm:$0xff]  }
  0x63   :  { %v2149_v27 = vld [vmem:[#allocation7 + $0x84] ss:$16 sps:$4 sm:$0xff]   ;;  %v2152_v28 = vld [vmem:[#allocation7 + $0x8c] ss:$16 sps:$4 sm:$0xff]   ;;  %v2147_v29 = vld [vmem:[#allocation7 + $0x80] ss:$16 sps:$4 sm:$0xff]  }
  0x64   :  { %1877 = vmatmul.mubr.msk.bf16.vlgmr.msra.gmra.mrb[0].mxu0 %vm144_vm0, %v95_v10  ;;  %1878 = vmatmul.mubr.msk.bf16.vlgmr.msra.gmra.mrb[0].mxu1 %vm144_vm0, %v95_v10  ;;  %v2150_v30 = vld [vmem:[#allocation7 + $0x88] ss:$16 sps:$4 sm:$0xff]   ;;  %v2153_v31 = vld [vmem:[#allocation7 + $0xa0] ss:$16 sps:$4 sm:$0xff]   ;;  %v2155_v32 = vld [vmem:[#allocation7 + $0xa4] ss:$16 sps:$4 sm:$0xff]  }
  0x65   :  { %1176 = vmatpush1.bf16.msra.mxu0 %v2123_v13  ;;  %1258 = vmatpush1.bf16.msra.mxu1 %v2126_v14  ;;  %v2156_v33 = vld [vmem:[#allocation7 + $0xa8] ss:$16 sps:$4 sm:$0xff]   ;;  %v2158_v34 = vld [vmem:[#allocation7 + $0xac] ss:$16 sps:$4 sm:$0xff]   ;;  %v2161_v35 = vld [vmem:[#allocation7 + $0xc4] ss:$16 sps:$4 sm:$0xff]  }
  0x66   :  { %1177 = vmatprep.subr.bf16.mxu0 %v2131_v15  ;;  %1259 = vmatprep.subr.bf16.mxu1 %v2134_v16  ;;  %v2164_v36 = vld [vmem:[#allocation7 + $0xcc] ss:$16 sps:$4 sm:$0xff]   ;;  %v2159_v37 = vld [vmem:[#allocation7 + $0xc0] ss:$16 sps:$4 sm:$0xff]   ;;  %v2162_v38 = vld [vmem:[#allocation7 + $0xc8] ss:$16 sps:$4 sm:$0xff]  }
  0x67   :  { %v2167_v39 = vld [vmem:[#allocation7 + $0xe4] ss:$16 sps:$4 sm:$0xff]   ;;  %v2170_v40 = vld [vmem:[#allocation7 + $0xec] ss:$16 sps:$4 sm:$0xff]   ;;  %v2165_v41 = vld [vmem:[#allocation7 + $0xe0] ss:$16 sps:$4 sm:$0xff]  }
  0x68   :  { %v2168_v42 = vld [vmem:[#allocation7 + $0xe8] ss:$16 sps:$4 sm:$0xff]   ;;  %v2173_v43 = vld [vmem:[#allocation7 + $0x104] ss:$16 sps:$4 sm:$0xff]   ;;  %v2176_v44 = vld [vmem:[#allocation7 + $0x10c] ss:$16 sps:$4 sm:$0xff]  }
  0x69   :  { %1178 = vmatpush1.bf16.msra.mxu0 %v2129_v17  ;;  %1260 = vmatpush1.bf16.msra.mxu1 %v2132_v18  ;;  %v2171_v45 = vld [vmem:[#allocation7 + $0x100] ss:$16 sps:$4 sm:$0xff]   ;;  %v2174_v46 = vld [vmem:[#allocation7 + $0x108] ss:$16 sps:$4 sm:$0xff]   ;;  %v2179_v47 = vld [vmem:[#allocation7 + $0x124] ss:$16 sps:$4 sm:$0xff]  }
  0x6a   :  { %1179 = vmatprep.subr.bf16.mxu0 %v2137_v19  ;;  %1261 = vmatprep.subr.bf16.mxu1 %v2140_v20  ;;  %v2182_v48 = vld [vmem:[#allocation7 + $0x12c] ss:$16 sps:$4 sm:$0xff]   ;;  %v2177_v49 = vld [vmem:[#allocation7 + $0x120] ss:$16 sps:$4 sm:$0xff]   ;;  %v2180_v50 = vld [vmem:[#allocation7 + $0x128] ss:$16 sps:$4 sm:$0xff]  }
  0x6b   :  { %v2185_v51 = vld [vmem:[#allocation7 + $0x144] ss:$16 sps:$4 sm:$0xff]   ;;  %v2188_v52 = vld [vmem:[#allocation7 + $0x14c] ss:$16 sps:$4 sm:$0xff]   ;;  %v2183_v53 = vld [vmem:[#allocation7 + $0x140] ss:$16 sps:$4 sm:$0xff]  }
  0x6c   :  { %v2186_v54 = vld [vmem:[#allocation7 + $0x148] ss:$16 sps:$4 sm:$0xff]   ;;  %v2191_v55 = vld [vmem:[#allocation7 + $0x164] ss:$16 sps:$4 sm:$0xff]   ;;  %v2194_v56 = vld [vmem:[#allocation7 + $0x16c] ss:$16 sps:$4 sm:$0xff]  }
  0x6d   :  { %1180 = vmatpush1.bf16.msra.mxu0 %v2135_v21  ;;  %1262 = vmatpush1.bf16.msra.mxu1 %v2138_v22  ;;  %v2189_v57 = vld [vmem:[#allocation7 + $0x160] ss:$16 sps:$4 sm:$0xff]   ;;  %v2192_v58 = vld [vmem:[#allocation7 + $0x168] ss:$16 sps:$4 sm:$0xff]   ;;  %v2197_v59 = vld [vmem:[#allocation7 + $0x184] ss:$16 sps:$4 sm:$0xff]  }
  0x6e   :  { %1181 = vmatprep.subr.bf16.mxu0 %v2143_v23  ;;  %1263 = vmatprep.subr.bf16.mxu1 %v2146_v24  ;;  %v2200_v60 = vld [vmem:[#allocation7 + $0x18c] ss:$16 sps:$4 sm:$0xff]   ;;  %v2195_v61 = vld [vmem:[#allocation7 + $0x180] ss:$16 sps:$4 sm:$0xff]   ;;  %v2198_v62 = vld [vmem:[#allocation7 + $0x188] ss:$16 sps:$4 sm:$0xff]  }
  0x6f   :  { %v2203_v63 = vld [vmem:[#allocation7 + $0x1a4] ss:$16 sps:$4 sm:$0xff]   ;;  %v2206_v0 = vld [vmem:[#allocation7 + $0x1ac] ss:$16 sps:$4 sm:$0xff]   ;;  %v2201_v1 = vld [vmem:[#allocation7 + $0x1a0] ss:$16 sps:$4 sm:$0xff]  }
  0x70   :  { %v2204_v2 = vld [vmem:[#allocation7 + $0x1a8] ss:$16 sps:$4 sm:$0xff]   ;;  %v2209_v3 = vld [vmem:[#allocation7 + $0x1c4] ss:$16 sps:$4 sm:$0xff]   ;;  %v2212_v4 = vld [vmem:[#allocation7 + $0x1cc] ss:$16 sps:$4 sm:$0xff]  }
  0x71   :  { %1182 = vmatpush1.bf16.msra.mxu0 %v2141_v25  ;;  %1264 = vmatpush1.bf16.msra.mxu1 %v2144_v26  ;;  %v2207_v5 = vld [vmem:[#allocation7 + $0x1c0] ss:$16 sps:$4 sm:$0xff]   ;;  %v2210_v6 = vld [vmem:[#allocation7 + $0x1c8] ss:$16 sps:$4 sm:$0xff]   ;;  %v2215_v7 = vld [vmem:[#allocation7 + $0x1e4] ss:$16 sps:$4 sm:$0xff]  }
  0x72   :  { %1183 = vmatprep.subr.bf16.mxu0 %v2149_v27  ;;  %1265 = vmatprep.subr.bf16.mxu1 %v2152_v28  ;;  %v2218_v8 = vld [vmem:[#allocation7 + $0x1ec] ss:$16 sps:$4 sm:$0xff]   ;;  %v2213_v9 = vld [vmem:[#allocation7 + $0x1e0] ss:$16 sps:$4 sm:$0xff]   ;;  %v2216_v10 = vld [vmem:[#allocation7 + $0x1e8] ss:$16 sps:$4 sm:$0xff]  }
  0x73   :  { %v2221_v11 = vld [vmem:[#allocation7 + $0x204] ss:$16 sps:$4 sm:$0xff]   ;;  %v2224_v12 = vld [vmem:[#allocation7 + $0x20c] ss:$16 sps:$4 sm:$0xff]   ;;  %s1858_s29 = sshll.u32 %s2530_s4, 4  ;;  %s1859_s29 = int_to_ptr.vmem [resolvable:$true] %s1858_s29 }
  0x74   :  { %s2489_s23 = scalar_lea.vmem %s1859_s29, 128  ;;  %p2494_p13 = scmp.lt.s32.totalorder %s1859_s29, %s1859_s29 }
  0x75   :  { %1184 = vmatpush1.bf16.msra.mxu0 %v2147_v29  ;;  %1266 = vmatpush1.bf16.msra.mxu1 %v2150_v30  ;;  %p2490_p12 = scmp.ne.s32.totalorder %s1859_s29, %s2489_s23  ;;  %p2495_p0 = scmp.lt.s32.totalorder %s2489_s23, %s2489_s23 }
  0x76   :  { %1185 = vmatprep.subr.bf16.mxu0 %v2155_v32  ;;  %1267 = vmatprep.subr.bf16.mxu1 %v2158_v34 }
  0x77   :  { %p2496_p1 = por %p2495_p0, %p2494_p13 }
  0x79   :  { %1186 = vmatpush1.bf16.msra.mxu0 %v2153_v31  ;;  %1268 = vmatpush1.bf16.msra.mxu1 %v2156_v33  ;;  %p2497_p2 = pnand %p2496_p1, %p2490_p12 }
  0x7a   :  { %1187 = vmatprep.subr.bf16.mxu0 %v2161_v35  ;;  %1269 = vmatprep.subr.bf16.mxu1 %v2164_v36 }
  0x7d   :  { %1188 = vmatpush1.bf16.msra.mxu0 %v2159_v37  ;;  %1270 = vmatpush1.bf16.msra.mxu1 %v2162_v38 }
  0x7e   :  { %1189 = vmatprep.subr.bf16.mxu0 %v2167_v39  ;;  %1271 = vmatprep.subr.bf16.mxu1 %v2170_v40 }
  0x81   :  { %1190 = vmatpush1.bf16.msra.mxu0 %v2165_v41  ;;  %1272 = vmatpush1.bf16.msra.mxu1 %v2168_v42 }
  0x82   :  { %1191 = vmatprep.subr.bf16.mxu0 %v2173_v43  ;;  %1273 = vmatprep.subr.bf16.mxu1 %v2176_v44 }
  0x85   :  { %1192 = vmatpush1.bf16.msra.mxu0 %v2171_v45  ;;  %1274 = vmatpush1.bf16.msra.mxu1 %v2174_v46 }
  0x86   :  { %1193 = vmatprep.subr.bf16.mxu0 %v2179_v47  ;;  %1275 = vmatprep.subr.bf16.mxu1 %v2182_v48 }
  0x89   :  { %1194 = vmatpush1.bf16.msra.mxu0 %v2177_v49  ;;  %1276 = vmatpush1.bf16.msra.mxu1 %v2180_v50 }
  0x8a   :  { %1195 = vmatprep.subr.bf16.mxu0 %v2185_v51  ;;  %1277 = vmatprep.subr.bf16.mxu1 %v2188_v52 }
  0x8d   :  { %1196 = vmatpush1.bf16.msra.mxu0 %v2183_v53  ;;  %1278 = vmatpush1.bf16.msra.mxu1 %v2186_v54 }
  0x8e   :  { %1197 = vmatprep.subr.bf16.mxu0 %v2191_v55  ;;  %1279 = vmatprep.subr.bf16.mxu1 %v2194_v56 }
  0x91   :  { %1198 = vmatpush1.bf16.msra.mxu0 %v2189_v57  ;;  %1280 = vmatpush1.bf16.msra.mxu1 %v2192_v58 }
  0x92   :  { %1199 = vmatprep.subr.bf16.mxu0 %v2197_v59  ;;  %1281 = vmatprep.subr.bf16.mxu1 %v2200_v60 }
  0x95   :  { %1200 = vmatpush1.bf16.msra.mxu0 %v2195_v61  ;;  %1282 = vmatpush1.bf16.msra.mxu1 %v2198_v62 }
  0x96   :  { %1201 = vmatprep.subr.bf16.mxu0 %v2203_v63  ;;  %1283 = vmatprep.subr.bf16.mxu1 %v2206_v0 }
  0x99   :  { %1202 = vmatpush1.bf16.msra.mxu0 %v2201_v1  ;;  %1284 = vmatpush1.bf16.msra.mxu1 %v2204_v2 }
  0x9a   :  { %1203 = vmatprep.subr.bf16.mxu0 %v2209_v3  ;;  %1285 = vmatprep.subr.bf16.mxu1 %v2212_v4 }
  0x9d   :  { %1204 = vmatpush1.bf16.msra.mxu0 %v2207_v5  ;;  %1286 = vmatpush1.bf16.msra.mxu1 %v2210_v6 }
  0x9e   :  { %1205 = vmatprep.subr.bf16.mxu0 %v2215_v7  ;;  %1287 = vmatprep.subr.bf16.mxu1 %v2218_v8 }
  0xa1   :  { %1206 = vmatpush1.bf16.msra.mxu0 %v2213_v9  ;;  %1288 = vmatpush1.bf16.msra.mxu1 %v2216_v10 }
  0xa2   :  { %1216 = vmatprep.subr.bf16.mxu0 %v2221_v11  ;;  %1298 = vmatprep.subr.bf16.mxu1 %v2224_v12 }
 0x137   :  { %v182_v13 = vpop.f32.mrb[0].mxu0  ;;  %v223_v14 = vpop.f32.mrb[0].mxu1 }
 0x138   :  { %v230_v15 = vrot.slane %v182_v13, 4  ;;  %v242_v16 = vrot.slane %v223_v14, 4  ;;  %v184_v17 = vpop.f32.mrb[1].mxu0  ;;  %v225_v18 = vpop.f32.mrb[1].mxu1 }
 0x139   :  { %v236_v19 = vrot.slane %v184_v17, 4  ;;  %v248_v20 = vrot.slane %v225_v18, 4  ;;  %v186_v21 = vpop.f32.mrb[2].mxu0  ;;  %v227_v22 = vpop.f32.mrb[2].mxu1 }
 0x13a   :  { %v231_v23 = vadd.f32 %v230_v15, %v182_v13  ;;  %v243_v24 = vadd.f32 %v242_v16, %v223_v14  ;;  %v187_v25 = vpop.f32.mrb[3].mxu0  ;;  %v228_v26 = vpop.f32.mrb[3].mxu1 }
 0x13b   :  { %v237_v27 = vadd.f32 %v236_v19, %v184_v17  ;;  %v249_v28 = vadd.f32 %v248_v20, %v225_v18  ;;  %v2529_v25 = vmov 1966171168  }
 0x13c   :  { %v232_v29 = vrot.slane %v231_v23, 2  ;;  %v244_v30 = vrot.slane %v243_v24, 2  ;;  %v310_v26 = vunpack.c.l.s4 %v2529_v25  ;;  %v2239_v25 = vld [vmem:[#allocation7 + $0x264] ss:$16 sps:$4 sm:$0xff]  }
 0x13d   :  { %v238_v31 = vrot.slane %v237_v27, 2  ;;  %v250_v32 = vrot.slane %v249_v28, 2 }
 0x13e   :  { %v233_v33 = vadd.f32 %v232_v29, %v231_v23  ;;  %v245_v34 = vadd.f32 %v244_v30, %v243_v24 }
 0x13f   :  { %v239_v35 = vadd.f32 %v238_v31, %v237_v27  ;;  %v251_v36 = vadd.f32 %v250_v32, %v249_v28  ;;  %v312_v27 = vlaneseq  ;;  %v311_v28 = vunpack.c.0.s8 %v310_v26  ;;  %v2242_v26 = vld [vmem:[#allocation7 + $0x26c] ss:$16 sps:$4 sm:$0xff]  }
 0x140   :  { %v234_v37 = vrot.slane %v233_v33, 1  ;;  %v246_v38 = vrot.slane %v245_v34, 1 }
 0x141   :  { %v240_v39 = vrot.slane %v239_v35, 1  ;;  %v252_v40 = vrot.slane %v251_v36, 1  ;;  %v313_v29 = vshrl.u32 %v312_v27, 7  ;;  %v2237_v27 = vld [vmem:[#allocation7 + $0x260] ss:$16 sps:$4 sm:$0xff]  }
 0x142   :  { %v235_v41 = vadd.f32 %v234_v37, %v233_v33  ;;  %v247_v42 = vadd.f32 %v246_v38, %v245_v34 }
 0x143   :  { %v241_v43 = vadd.f32 %v240_v39, %v239_v35  ;;  %v253_v44 = vadd.f32 %v252_v40, %v251_v36  ;;  %v2650_v32 = vsub.s32 %v311_v28, %v313_v29  ;;  %v87_v40 = vld [vmem:[#allocation10] ss:$8 sm:$0xf] }
 0x144   :  { %v255_v45 = vmul.f32 0.125, %v235_v41  ;;  %v257_v46 = vmul.f32 0.125, %v247_v42  ;;  %v2654_v41 = vsub.s32 3, %v313_v29  ;;  %v89_v42 = vld [vmem:[#allocation10 + $0x1] ss:$8 sm:$0xf] }
 0x145   :  { %v256_v47 = vmul.f32 0.125, %v241_v43  ;;  %v258_v48 = vmul.f32 0.125, %v253_v44  ;;  %v2657_v44 = vsub.s32 1, %v313_v29  ;;  %v2240_v28 = vld [vmem:[#allocation7 + $0x268] ss:$16 sps:$4 sm:$0xff]  }
 0x146   :  { %v2634_v49 = vsub.f32 %v182_v13, %v255_v45  ;;  %v2636_v50 = vsub.f32 %v223_v14, %v257_v46  ;;  %v2659_v45 = vsub.s32 0, %v313_v29  ;;  %v2661_v46 = vsub.s32 2, %v313_v29  ;;  %v2245_v29 = vld [vmem:[#allocation7 + $0x284] ss:$16 sps:$4 sm:$0xff]  }
 0x147   :  { %v2638_v51 = vsub.f32 %v184_v17, %v256_v47  ;;  %v2640_v52 = vsub.f32 %v225_v18, %v258_v48  ;;  %v374_v48 = vrot.slane %v89_v42, %v2654_v41 }
 0x148   :  { %v263_v53 = vmul.f32 %v2634_v49, %v2634_v49  ;;  %v265_v54 = vmul.f32 %v2636_v50, %v2636_v50 }
 0x149   :  { %v264_v55 = vmul.f32 %v2638_v51, %v2638_v51  ;;  %v266_v56 = vmul.f32 %v2640_v52, %v2640_v52 }
 0x14a   :  { %v267_v57 = vrot.slane %v263_v53, 4  ;;  %v279_v58 = vrot.slane %v265_v54, 4 }
 0x14b   :  { %v273_v59 = vrot.slane %v264_v55, 4  ;;  %v285_v60 = vrot.slane %v266_v56, 4 }
 0x14c   :  { %v268_v61 = vadd.f32 %v267_v57, %v263_v53  ;;  %v280_v62 = vadd.f32 %v279_v58, %v265_v54  ;;  %v366_v53 = vrot.slane %v89_v42, %v2657_v44  ;;  %v362_v54 = vrot.slane %v89_v42, %v2659_v45 }
 0x14d   :  { %v274_v63 = vadd.f32 %v273_v59, %v264_v55  ;;  %v286_v0 = vadd.f32 %v285_v60, %v266_v56  ;;  %v370_v55 = vrot.slane %v89_v42, %v2661_v46  ;;  %v2258_v42 = vld [vmem:[#allocation7 + $0x2c8] ss:$16 sps:$4 sm:$0xff]  }
 0x14e   :  { %v269_v1 = vrot.slane %v268_v61, 2  ;;  %v281_v2 = vrot.slane %v280_v62, 2 }
 0x14f   :  { %v275_v3 = vrot.slane %v274_v63, 2  ;;  %v287_v4 = vrot.slane %v286_v0, 2 }
 0x150   :  { %v270_v5 = vadd.f32 %v269_v1, %v268_v61  ;;  %v282_v6 = vadd.f32 %v281_v2, %v280_v62 }
 0x151   :  { %v276_v7 = vadd.f32 %v275_v3, %v274_v63  ;;  %v288_v8 = vadd.f32 %v287_v4, %v286_v0 }
 0x152   :  { %v271_v9 = vrot.slane %v270_v5, 1  ;;  %v283_v10 = vrot.slane %v282_v6, 1 }
 0x153   :  { %v277_v11 = vrot.slane %v276_v7, 1  ;;  %v289_v12 = vrot.slane %v288_v8, 1 }
 0x154   :  { %v272_v13 = vadd.f32 %v271_v9, %v270_v5  ;;  %v284_v14 = vadd.f32 %v283_v10, %v282_v6 }
 0x155   :  { %v278_v15 = vadd.f32 %v277_v11, %v276_v7  ;;  %v290_v16 = vadd.f32 %v289_v12, %v288_v8  ;;  %v2219_v11 = vld [vmem:[#allocation7 + $0x200] ss:$16 sps:$4 sm:$0xff]   ;;  %v2222_v12 = vld [vmem:[#allocation7 + $0x208] ss:$16 sps:$4 sm:$0xff]  }
 0x156   :  { %v291_v17 = vmul.f32 0.125, %v272_v13  ;;  %v293_v18 = vmul.f32 0.125, %v284_v14 }
 0x157   :  { %v292_v19 = vmul.f32 0.125, %v278_v15  ;;  %v294_v20 = vmul.f32 0.125, %v290_v16  ;;  %v2227_v16 = vld [vmem:[#allocation7 + $0x224] ss:$16 sps:$4 sm:$0xff]  }
 0x158   :  { %v295_v21 = vadd.f32 1e-05, %v291_v17  ;;  %v297_v22 = vadd.f32 1e-05, %v293_v18  ;;  %v2230_v17 = vld [vmem:[#allocation7 + $0x22c] ss:$16 sps:$4 sm:$0xff]  }
 0x159   :  { %v296_v23 = vadd.f32 1e-05, %v292_v19  ;;  %v298_v24 = vadd.f32 1e-05, %v294_v20  ;;  %v2225_v19 = vld [vmem:[#allocation7 + $0x220] ss:$16 sps:$4 sm:$0xff]  }
 0x15a   :  { %2347 = vrsqrt.f32 %v295_v21  ;;  %v2228_v20 = vld [vmem:[#allocation7 + $0x228] ss:$16 sps:$4 sm:$0xff]   ;;  %v2233_v21 = vld [vmem:[#allocation7 + $0x244] ss:$16 sps:$4 sm:$0xff]  }
 0x15b   :  { %2349 = vrsqrt.f32 %v297_v22  ;;  %v2236_v22 = vld [vmem:[#allocation7 + $0x24c] ss:$16 sps:$4 sm:$0xff]  }
 0x15c   :  { %2351 = vrsqrt.f32 %v296_v23  ;;  %v2231_v23 = vld [vmem:[#allocation7 + $0x240] ss:$16 sps:$4 sm:$0xff]  }
 0x15d   :  { %2353 = vrsqrt.f32 %v298_v24  ;;  %v2234_v24 = vld [vmem:[#allocation7 + $0x248] ss:$16 sps:$4 sm:$0xff]  }
 0x164   :  { %v2348_v30 = vpop.eup %2347 }
 0x165   :  { %v2350_v31 = vpop.eup %2349 }
 0x166   :  { %v2352_v33 = vpop.eup %2351 }
 0x167   :  { %v2354_v34 = vpop.eup %2353  ;;  %v307_v35 = vcombine.low %v2348_v30, %v2352_v33  ;;  %v2248_v30 = vld [vmem:[#allocation7 + $0x28c] ss:$16 sps:$4 sm:$0xff]   ;;  %v2246_v33 = vld [vmem:[#allocation7 + $0x288] ss:$16 sps:$4 sm:$0xff]  }
 0x168   :  { %v308_v36 = vcombine.low %v2350_v31, %v2354_v34  ;;  %v2243_v31 = vld [vmem:[#allocation7 + $0x280] ss:$16 sps:$4 sm:$0xff]   ;;  %v2251_v34 = vld [vmem:[#allocation7 + $0x2a4] ss:$16 sps:$4 sm:$0xff]  }
 0x169   :  { %v315_v37 = vrot.slane %v307_v35, %v2650_v32  ;;  %v2254_v35 = vld [vmem:[#allocation7 + $0x2ac] ss:$16 sps:$4 sm:$0xff]  }
 0x16a   :  { %v322_v38 = vrot.slane %v308_v36, %v2650_v32  ;;  %v2249_v36 = vld [vmem:[#allocation7 + $0x2a0] ss:$16 sps:$4 sm:$0xff]  }
 0x16c   :  { %v323_v39 = vcombine.low %v315_v37, %v322_v38  ;;  %v2252_v37 = vld [vmem:[#allocation7 + $0x2a8] ss:$16 sps:$4 sm:$0xff]   ;;  %v2257_v38 = vld [vmem:[#allocation7 + $0x2c4] ss:$16 sps:$4 sm:$0xff]  }
 0x16e   :  { %v330_v43 = vrot.slane %v323_v39, %v2650_v32  ;;  %v2260_v39 = vld [vmem:[#allocation7 + $0x2cc] ss:$16 sps:$4 sm:$0xff]  }
 0x170   :  { %v332_v47 = vmul.f32 %v330_v43, %v87_v40  ;;  %v2255_v40 = vld [vmem:[#allocation7 + $0x2c0] ss:$16 sps:$4 sm:$0xff]   ;;  %v2263_v43 = vld [vmem:[#allocation7 + $0x2e4] ss:$16 sps:$4 sm:$0xff]  }
 0x172   :  { %v349_v56 = vrot.slane %v332_v47, %v2654_v41  ;;  %v341_v57 = vrot.slane %v332_v47, %v2657_v44  ;;  %v337_v58 = vrot.slane %v332_v47, %v2659_v45  ;;  %v345_v59 = vrot.slane %v332_v47, %v2661_v46  ;;  %v2266_v47 = vld [vmem:[#allocation7 + $0x2ec] ss:$16 sps:$4 sm:$0xff]  }
 0x174   :  { %v357_v60 = vmul.f32 %v349_v56, %v2640_v52  ;;  %v355_v61 = vmul.f32 %v341_v57, %v2638_v51  ;;  %v354_v62 = vmul.f32 %v337_v58, %v2634_v49  ;;  %v356_v63 = vmul.f32 %v345_v59, %v2636_v50  ;;  %v2267_v56 = vld [vmem:[#allocation7 + $0x300] ss:$16 sps:$4 sm:$0xff]   ;;  %v2270_v57 = vld [vmem:[#allocation7 + $0x308] ss:$16 sps:$4 sm:$0xff]   ;;  %v2275_v58 = vld [vmem:[#allocation7 + $0x324] ss:$16 sps:$4 sm:$0xff]  }
 0x175   :  { %v2278_v59 = vld [vmem:[#allocation7 + $0x32c] ss:$16 sps:$4 sm:$0xff]  }
 0x176   :  { %v382_v0 = vadd.f32 %v374_v48, %v357_v60  ;;  %v380_v1 = vadd.f32 %v366_v53, %v355_v61  ;;  %v379_v2 = vadd.f32 %v362_v54, %v354_v62  ;;  %v2675_v3 = vadd.f32 %v370_v55, %v356_v63  ;;  %v2261_v48 = vld [vmem:[#allocation7 + $0x2e0] ss:$16 sps:$4 sm:$0xff]   ;;  %v2264_v53 = vld [vmem:[#allocation7 + $0x2e8] ss:$16 sps:$4 sm:$0xff]   ;;  %v2269_v54 = vld [vmem:[#allocation7 + $0x304] ss:$16 sps:$4 sm:$0xff]  }
 0x177   :  { %v2272_v55 = vld [vmem:[#allocation7 + $0x30c] ss:$16 sps:$4 sm:$0xff]   ;;  %v2273_v60 = vld [vmem:[#allocation7 + $0x320] ss:$16 sps:$4 sm:$0xff]   ;;  %v2276_v61 = vld [vmem:[#allocation7 + $0x328] ss:$16 sps:$4 sm:$0xff]  }
 0x178   :  { %v389_v4 = vmul.f32 1.442695, %v380_v1  ;;  %v387_v5 = vmul.f32 1.442695, %v379_v2  ;;  %v393_v6 = vmul.f32 1.442695, %v382_v0 }
 0x179   :  { %vm384_vm1 = vcmp.gt.f32.partialorder %v380_v1, 0.0  ;;  %vm383_vm2 = vcmp.gt.f32.partialorder %v379_v2, 0.0  ;;  %vm386_vm3 = vcmp.gt.f32.partialorder %v382_v0, 0.0  ;;  %v2281_v62 = vld [vmem:[#allocation7 + $0x344] ss:$16 sps:$4 sm:$0xff]   ;;  %vm385_vm4 = vcmp.gt.f32.partialorder %v2675_v3, 0.0 }
 0x17a   :  { %2355 = vpow2.f32 %v389_v4  ;;  %v2284_v63 = vld [vmem:[#allocation7 + $0x34c] ss:$16 sps:$4 sm:$0xff]  }
 0x17b   :  { %2357 = vpow2.f32 %v387_v5  ;;  %v2290_v4 = vld [vmem:[#allocation7 + $0x36c] ss:$16 sps:$4 sm:$0xff]   ;;  %v391_v5 = vmul.f32 1.442695, %v2675_v3 }
 0x17c   :  { %2359 = vpow2.f32 %v393_v6  ;;  %v2285_v6 = vld [vmem:[#allocation7 + $0x360] ss:$16 sps:$4 sm:$0xff]  }
 0x17d   :  { %2361 = vpow2.f32 %v391_v5 }
 0x184   :  { %v2356_v7 = vpop.eup %2355 }
 0x185   :  { %v2358_v8 = vpop.eup %2357  ;;  %v1880_v52 = vadd.f32 -1.0, %v2356_v7  ;;  %v2288_v7 = vld [vmem:[#allocation7 + $0x368] ss:$16 sps:$4 sm:$0xff]  }
 0x186   :  { %v2360_v9 = vpop.eup %2359  ;;  %v1879_v51 = vadd.f32 -1.0, %v2358_v8  ;;  %v2293_v8 = vld [vmem:[#allocation7 + $0x384] ss:$16 sps:$4 sm:$0xff]  }
 0x187   :  { %v400_v49 = vsel %vm384_vm1, %v380_v1, %v1880_v52  ;;  %v1882_v50 = vadd.f32 -1.0, %v2360_v9  ;;  %v2282_v1 = vld [vmem:[#allocation7 + $0x348] ss:$16 sps:$4 sm:$0xff]   ;;  %v2296_v52 = vld [vmem:[#allocation7 + $0x38c] ss:$16 sps:$4 sm:$0xff]  }
 0x188   :  { %v404_v10 = vpack.c.bf16 %v400_v49, %v400_v49  ;;  %v399_v13 = vsel %vm383_vm2, %v379_v2, %v1879_v51  ;;  %v2287_v2 = vld [vmem:[#allocation7 + $0x364] ss:$16 sps:$4 sm:$0xff]   ;;  %v2291_v9 = vld [vmem:[#allocation7 + $0x380] ss:$16 sps:$4 sm:$0xff]   ;;  %v2294_v51 = vld [vmem:[#allocation7 + $0x388] ss:$16 sps:$4 sm:$0xff]  }
 0x189   :  { %v403_v14 = vpack.c.bf16 %v399_v13, %v399_v13  ;;  %v402_v15 = vsel %vm386_vm3, %v382_v0, %v1882_v50  ;;  %v2279_v0 = vld [vmem:[#allocation7 + $0x340] ss:$16 sps:$4 sm:$0xff]   ;;  %v2299_v49 = vld [vmem:[#allocation7 + $0x3a4] ss:$16 sps:$4 sm:$0xff]   ;;  %v2302_v50 = vld [vmem:[#allocation7 + $0x3ac] ss:$16 sps:$4 sm:$0xff]  }
 0x18a   :  { %1207 = vmatprep.mubr.bf16.mxu0 %v404_v10  ;;  %1289 = vmatprep.mubr.bf16.mxu1 %v404_v10  ;;  %v406_v18 = vpack.c.bf16 %v402_v15, %v402_v15  ;;  %v2297_v10 = vld [vmem:[#allocation7 + $0x3a0] ss:$16 sps:$4 sm:$0xff]   ;;  %v2308_v13 = vld [vmem:[#allocation7 + $0x3cc] ss:$16 sps:$4 sm:$0xff]  }
 0x18b   :  { %1208 = vmatmul.mubr.bf16.vlgmr.msra.gmra.mrb[4].mxu0 %v403_v14  ;;  %1290 = vmatmul.mubr.bf16.vlgmr.msra.gmra.mrb[4].mxu1 %v403_v14  ;;  %v2362_v14 = vpop.eup %2361  ;;  %v2303_v15 = vld [vmem:[#allocation7 + $0x3c0] ss:$16 sps:$4 sm:$0xff]  }
 0x18c   :  { %1217 = vmatpush1.bf16.msra.mxu0 %v2219_v11  ;;  %1299 = vmatpush1.bf16.msra.mxu1 %v2222_v12  ;;  %v2300_v11 = vld [vmem:[#allocation7 + $0x3a8] ss:$16 sps:$4 sm:$0xff]   ;;  %v2305_v12 = vld [vmem:[#allocation7 + $0x3c4] ss:$16 sps:$4 sm:$0xff]  }
 0x18d   :  { %1248 = vmatprep.mubr.bf16.mxu0 %v406_v18  ;;  %1330 = vmatprep.mubr.bf16.mxu1 %v406_v18  ;;  %v2314_v18 = vld [vmem:[#allocation7 + $0x3ec] ss:$16 sps:$4 sm:$0xff]  }
 0x18e   :  { %1218 = vmatprep.subr.bf16.mxu0 %v2227_v16  ;;  %1300 = vmatprep.subr.bf16.mxu1 %v2230_v17  ;;  %v2306_v16 = vld [vmem:[#allocation7 + $0x3c8] ss:$16 sps:$4 sm:$0xff]   ;;  %v2311_v17 = vld [vmem:[#allocation7 + $0x3e4] ss:$16 sps:$4 sm:$0xff]  }
 0x190   :  { %1219 = vmatpush1.bf16.msra.mxu0 %v2225_v19  ;;  %1301 = vmatpush1.bf16.msra.mxu1 %v2228_v20  ;;  %v1881_v19 = vadd.f32 -1.0, %v2362_v14  ;;  %v2309_v20 = vld [vmem:[#allocation7 + $0x3e0] ss:$16 sps:$4 sm:$0xff]  }
 0x191   :  { %1220 = vmatprep.subr.bf16.mxu0 %v2233_v21  ;;  %1302 = vmatprep.subr.bf16.mxu1 %v2236_v22  ;;  %v2312_v21 = vld [vmem:[#allocation7 + $0x3e8] ss:$16 sps:$4 sm:$0xff]  }
 0x192   :  { %v401_v22 = vsel %vm385_vm4, %v2675_v3, %v1881_v19  ;;  %v2323_v3 = vld [vmem:[#allocation8 + $0x50] sm:$0xff]  }
 0x194   :  { %1221 = vmatpush1.bf16.msra.mxu0 %v2231_v23  ;;  %1303 = vmatpush1.bf16.msra.mxu1 %v2234_v24  ;;  %v405_v23 = vpack.c.bf16 %v401_v22, %v401_v22  ;;  %v2315_v24 = vld [vmem:[#allocation8 + $0x40] sm:$0xff]  }
 0x195   :  { %1222 = vmatprep.subr.bf16.mxu0 %v2239_v25  ;;  %1304 = vmatprep.subr.bf16.mxu1 %v2242_v26  ;;  %v2316_v25 = vld [vmem:[#allocation8 + $0xc0] sm:$0xff]  }
 0x196   :  { %v2317_v26 = vld [vmem:[#allocation8] sm:$0xff]  }
 0x198   :  { %1223 = vmatpush1.bf16.msra.mxu0 %v2237_v27  ;;  %1305 = vmatpush1.bf16.msra.mxu1 %v2240_v28  ;;  %v2318_v27 = vld [vmem:[#allocation8 + $0x80] sm:$0xff]   ;;  %v2319_v28 = vld [vmem:[#allocation8 + $0x48] sm:$0xff]  }
 0x199   :  { %1224 = vmatprep.subr.bf16.mxu0 %v2245_v29  ;;  %1306 = vmatprep.subr.bf16.mxu1 %v2248_v30  ;;  %v2320_v29 = vld [vmem:[#allocation8 + $0xc8] sm:$0xff]  }
 0x19a   :  { %v2321_v30 = vld [vmem:[#allocation8 + $0x8] sm:$0xff]  }
 0x19c   :  { %1225 = vmatpush1.bf16.msra.mxu0 %v2243_v31  ;;  %1307 = vmatpush1.bf16.msra.mxu1 %v2246_v33  ;;  %v2322_v31 = vld [vmem:[#allocation8 + $0x88] sm:$0xff]   ;;  %v2324_v33 = vld [vmem:[#allocation8 + $0xd0] sm:$0xff]  }
 0x19d   :  { %1226 = vmatprep.subr.bf16.mxu0 %v2251_v34  ;;  %1308 = vmatprep.subr.bf16.mxu1 %v2254_v35  ;;  %v2325_v34 = vld [vmem:[#allocation8 + $0x10] sm:$0xff]  }
 0x19e   :  { %v2326_v35 = vld [vmem:[#allocation8 + $0x90] sm:$0xff]  }
 0x1a0   :  { %1227 = vmatpush1.bf16.msra.mxu0 %v2249_v36  ;;  %1309 = vmatpush1.bf16.msra.mxu1 %v2252_v37  ;;  %v2327_v36 = vld [vmem:[#allocation8 + $0x58] sm:$0xff]  }
 0x1a1   :  { %1228 = vmatprep.subr.bf16.mxu0 %v2257_v38  ;;  %1310 = vmatprep.subr.bf16.mxu1 %v2260_v39  ;;  %v2328_v37 = vld [vmem:[#allocation8 + $0xd8] sm:$0xff]  }
 0x1a2   :  { %v2329_v38 = vld [vmem:[#allocation8 + $0x18] sm:$0xff]  }
 0x1a3   :  { %v2330_v39 = vld [vmem:[#allocation8 + $0x98] sm:$0xff]  }
 0x1a4   :  { %1229 = vmatpush1.bf16.msra.mxu0 %v2255_v40  ;;  %1311 = vmatpush1.bf16.msra.mxu1 %v2258_v42  ;;  %v2331_v40 = vld [vmem:[#allocation8 + $0x60] sm:$0xff]  }
 0x1a5   :  { %1230 = vmatprep.subr.bf16.mxu0 %v2263_v43  ;;  %1312 = vmatprep.subr.bf16.mxu1 %v2266_v47  ;;  %v2332_v42 = vld [vmem:[#allocation8 + $0xe0] sm:$0xff]  }
 0x1a6   :  { %v2333_v43 = vld [vmem:[#allocation8 + $0x20] sm:$0xff]  }
 0x1a7   :  { %v2334_v47 = vld [vmem:[#allocation8 + $0xa0] sm:$0xff]  }
 0x1a8   :  { %1231 = vmatpush1.bf16.msra.mxu0 %v2261_v48  ;;  %1313 = vmatpush1.bf16.msra.mxu1 %v2264_v53  ;;  %v2335_v48 = vld [vmem:[#allocation8 + $0x68] sm:$0xff]  }
 0x1a9   :  { %1232 = vmatprep.subr.bf16.mxu0 %v2269_v54  ;;  %1314 = vmatprep.subr.bf16.mxu1 %v2272_v55  ;;  %v2336_v53 = vld [vmem:[#allocation8 + $0xe8] sm:$0xff]  }
 0x1aa   :  { %v2337_v54 = vld [vmem:[#allocation8 + $0x28] sm:$0xff]  }
 0x1ab   :  { %v2338_v55 = vld [vmem:[#allocation8 + $0xa8] sm:$0xff]  }
 0x1ac   :  { %1233 = vmatpush1.bf16.msra.mxu0 %v2267_v56  ;;  %1315 = vmatpush1.bf16.msra.mxu1 %v2270_v57  ;;  %v2339_v56 = vld [vmem:[#allocation8 + $0x70] sm:$0xff]  }
 0x1ad   :  { %1234 = vmatprep.subr.bf16.mxu0 %v2275_v58  ;;  %1316 = vmatprep.subr.bf16.mxu1 %v2278_v59  ;;  %v2340_v57 = vld [vmem:[#allocation8 + $0xf0] sm:$0xff]  }
 0x1ae   :  { %v2341_v58 = vld [vmem:[#allocation8 + $0x30] sm:$0xff]  }
 0x1af   :  { %v2342_v59 = vld [vmem:[#allocation8 + $0xb0] sm:$0xff]  }
 0x1b0   :  { %1235 = vmatpush1.bf16.msra.mxu0 %v2273_v60  ;;  %1317 = vmatpush1.bf16.msra.mxu1 %v2276_v61  ;;  %v2343_v60 = vld [vmem:[#allocation8 + $0x78] sm:$0xff]  }
 0x1b1   :  { %1236 = vmatprep.subr.bf16.mxu0 %v2281_v62  ;;  %1318 = vmatprep.subr.bf16.mxu1 %v2284_v63  ;;  %v2344_v61 = vld [vmem:[#allocation8 + $0xf8] sm:$0xff]  }
 0x1b2   :  { %v2345_v62 = vld [vmem:[#allocation8 + $0x38] sm:$0xff]  }
 0x1b3   :  { %v2346_v63 = vld [vmem:[#allocation8 + $0xb8] sm:$0xff]  }
 0x1b4   :  { %1237 = vmatpush1.bf16.msra.mxu0 %v2279_v0  ;;  %1319 = vmatpush1.bf16.msra.mxu1 %v2282_v1 }
 0x1b5   :  { %1238 = vmatprep.subr.bf16.mxu0 %v2287_v2  ;;  %1320 = vmatprep.subr.bf16.mxu1 %v2290_v4 }
 0x1b8   :  { %1239 = vmatpush1.bf16.msra.mxu0 %v2285_v6  ;;  %1321 = vmatpush1.bf16.msra.mxu1 %v2288_v7 }
 0x1b9   :  { %1240 = vmatprep.subr.bf16.mxu0 %v2293_v8  ;;  %1322 = vmatprep.subr.bf16.mxu1 %v2296_v52 }
 0x1bc   :  { %1241 = vmatpush1.bf16.msra.mxu0 %v2291_v9  ;;  %1323 = vmatpush1.bf16.msra.mxu1 %v2294_v51 }
 0x1bd   :  { %1242 = vmatprep.subr.bf16.mxu0 %v2299_v49  ;;  %1324 = vmatprep.subr.bf16.mxu1 %v2302_v50 }
 0x1c0   :  { %1243 = vmatpush1.bf16.msra.mxu0 %v2297_v10  ;;  %1325 = vmatpush1.bf16.msra.mxu1 %v2300_v11 }
 0x1c1   :  { %1244 = vmatprep.subr.bf16.mxu0 %v2305_v12  ;;  %1326 = vmatprep.subr.bf16.mxu1 %v2308_v13 }
 0x1c4   :  { %1245 = vmatpush1.bf16.msra.mxu0 %v2303_v15  ;;  %1327 = vmatpush1.bf16.msra.mxu1 %v2306_v16 }
 0x1c5   :  { %1246 = vmatprep.subr.bf16.mxu0 %v2311_v17  ;;  %1328 = vmatprep.subr.bf16.mxu1 %v2314_v18 }
 0x1c8   :  { %1247 = vmatpush1.bf16.msra.mxu0 %v2309_v20  ;;  %1329 = vmatpush1.bf16.msra.mxu1 %v2312_v21 }
 0x1c9   :  { %2047 = vmatprep.subr.bf16.mxu0 %v2315_v24  ;;  %2069 = vmatprep.subr.bf16.mxu1 %v2316_v25 }
 0x1cb   :  { %1249 = vmatmul.mubr.bf16.vlgmr.msra.gmra.mrb[4].mxu0 %v405_v23  ;;  %1331 = vmatmul.mubr.bf16.vlgmr.msra.gmra.mrb[4].mxu1 %v405_v23 }
 0x1cc   :  { %2048 = vmatpush3.bf16.msra.mxu0 %v2317_v26  ;;  %2070 = vmatpush3.bf16.msra.mxu1 %v2318_v27 }
 0x1cd   :  { %2049 = vmatprep.subr.bf16.mxu0 %v2319_v28  ;;  %2071 = vmatprep.subr.bf16.mxu1 %v2320_v29 }
 0x1d0   :  { %2050 = vmatpush3.bf16.msra.mxu0 %v2321_v30  ;;  %2072 = vmatpush3.bf16.msra.mxu1 %v2322_v31 }
 0x1d1   :  { %2051 = vmatprep.subr.bf16.mxu0 %v2323_v3  ;;  %2073 = vmatprep.subr.bf16.mxu1 %v2324_v33 }
 0x1d4   :  { %2052 = vmatpush3.bf16.msra.mxu0 %v2325_v34  ;;  %2074 = vmatpush3.bf16.msra.mxu1 %v2326_v35 }
 0x1d5   :  { %2053 = vmatprep.subr.bf16.mxu0 %v2327_v36  ;;  %2075 = vmatprep.subr.bf16.mxu1 %v2328_v37 }
 0x1d8   :  { %2054 = vmatpush3.bf16.msra.mxu0 %v2329_v38  ;;  %2076 = vmatpush3.bf16.msra.mxu1 %v2330_v39 }
 0x1d9   :  { %2055 = vmatprep.subr.bf16.mxu0 %v2331_v40  ;;  %2077 = vmatprep.subr.bf16.mxu1 %v2332_v42 }
 0x1dc   :  { %2056 = vmatpush3.bf16.msra.mxu0 %v2333_v43  ;;  %2078 = vmatpush3.bf16.msra.mxu1 %v2334_v47 }
 0x1dd   :  { %2057 = vmatprep.subr.bf16.mxu0 %v2335_v48  ;;  %2079 = vmatprep.subr.bf16.mxu1 %v2336_v53 }
 0x1e0   :  { %2058 = vmatpush3.bf16.msra.mxu0 %v2337_v54  ;;  %2080 = vmatpush3.bf16.msra.mxu1 %v2338_v55 }
 0x1e1   :  { %2059 = vmatprep.subr.bf16.mxu0 %v2339_v56  ;;  %2081 = vmatprep.subr.bf16.mxu1 %v2340_v57 }
 0x1e4   :  { %2060 = vmatpush3.bf16.msra.mxu0 %v2341_v58  ;;  %2082 = vmatpush3.bf16.msra.mxu1 %v2342_v59 }
 0x1e5   :  { %2061 = vmatprep.subr.bf16.mxu0 %v2343_v60  ;;  %2083 = vmatprep.subr.bf16.mxu1 %v2344_v61 }
 0x1e8   :  { %2062 = vmatpush3.bf16.msra.mxu0 %v2345_v62  ;;  %2084 = vmatpush3.bf16.msra.mxu1 %v2346_v63 }
 0x29e   :  { %v1250_v0 = vpop.f32.mrb[4].mxu0  ;;  %v1332_v1 = vpop.f32.mrb[4].mxu1 }
 0x29f   :  { %v1339_v2 = vrot.slane %v1250_v0, 4  ;;  %v1351_v4 = vrot.slane %v1332_v1, 4  ;;  %v1252_v5 = vpop.f32.mrb[5].mxu0  ;;  %v1334_v6 = vpop.f32.mrb[5].mxu1 }
 0x2a0   :  { %v1345_v7 = vrot.slane %v1252_v5, 4  ;;  %v1357_v8 = vrot.slane %v1334_v6, 4  ;;  %v1254_v52 = vpop.f32.mrb[6].mxu0  ;;  %v1336_v9 = vpop.f32.mrb[6].mxu1 }
 0x2a1   :  { %v1340_v51 = vadd.f32 %v1339_v2, %v1250_v0  ;;  %v1352_v49 = vadd.f32 %v1351_v4, %v1332_v1  ;;  %v1255_v50 = vpop.f32.mrb[7].mxu0  ;;  %v1337_v10 = vpop.f32.mrb[7].mxu1 }
 0x2a2   :  { %v1346_v11 = vadd.f32 %v1345_v7, %v1252_v5  ;;  %v1358_v12 = vadd.f32 %v1357_v8, %v1334_v6 }
 0x2a3   :  { %v1341_v13 = vrot.slane %v1340_v51, 2  ;;  %v1353_v14 = vrot.slane %v1352_v49, 2 }
 0x2a4   :  { %v1347_v15 = vrot.slane %v1346_v11, 2  ;;  %v1359_v16 = vrot.slane %v1358_v12, 2 }
 0x2a5   :  { %v1342_v17 = vadd.f32 %v1341_v13, %v1340_v51  ;;  %v1354_v18 = vadd.f32 %v1353_v14, %v1352_v49 }
 0x2a6   :  { %v1348_v19 = vadd.f32 %v1347_v15, %v1346_v11  ;;  %v1360_v20 = vadd.f32 %v1359_v16, %v1358_v12 }
 0x2a7   :  { %v1343_v21 = vrot.slane %v1342_v17, 1  ;;  %v1355_v22 = vrot.slane %v1354_v18, 1 }
 0x2a8   :  { %v1349_v23 = vrot.slane %v1348_v19, 1  ;;  %v1361_v24 = vrot.slane %v1360_v20, 1 }
 0x2a9   :  { %v1344_v25 = vadd.f32 %v1343_v21, %v1342_v17  ;;  %v1356_v26 = vadd.f32 %v1355_v22, %v1354_v18 }
 0x2aa   :  { %v1350_v27 = vadd.f32 %v1349_v23, %v1348_v19  ;;  %v1362_v28 = vadd.f32 %v1361_v24, %v1360_v20  ;;  %v91_v23 = vld [vmem:[#allocation10 + $0x2] ss:$8 sm:$0xf]  ;;  %v93_v24 = vld [vmem:[#allocation10 + $0x3] ss:$8 sm:$0xf] }
 0x2ab   :  { %v1363_v29 = vmul.f32 0.125, %v1344_v25  ;;  %v1365_v30 = vmul.f32 0.125, %v1356_v26 }
 0x2ac   :  { %v1364_v31 = vmul.f32 0.125, %v1350_v27  ;;  %v1366_v3 = vmul.f32 0.125, %v1362_v28  ;;  %v1482_v27 = vrot.slane %v93_v24, %v2654_v41  ;;  %v1474_v28 = vrot.slane %v93_v24, %v2657_v44 }
 0x2ad   :  { %v2680_v33 = vsub.f32 %v1250_v0, %v1363_v29  ;;  %v2682_v34 = vsub.f32 %v1332_v1, %v1365_v30  ;;  %v1470_v29 = vrot.slane %v93_v24, %v2659_v45  ;;  %v1478_v30 = vrot.slane %v93_v24, %v2661_v46 }
 0x2ae   :  { %v2684_v35 = vsub.f32 %v1252_v5, %v1364_v31  ;;  %v1370_v36 = vsub.f32 %v1334_v6, %v1366_v3 }
 0x2af   :  { %v1371_v37 = vmul.f32 %v2680_v33, %v2680_v33  ;;  %v1373_v38 = vmul.f32 %v2682_v34, %v2682_v34 }
 0x2b0   :  { %v1372_v39 = vmul.f32 %v2684_v35, %v2684_v35  ;;  %v1374_v40 = vmul.f32 %v1370_v36, %v1370_v36 }
 0x2b1   :  { %v1375_v42 = vrot.slane %v1371_v37, 4  ;;  %v1387_v43 = vrot.slane %v1373_v38, 4 }
 0x2b2   :  { %v1381_v47 = vrot.slane %v1372_v39, 4  ;;  %v1393_v48 = vrot.slane %v1374_v40, 4 }
 0x2b3   :  { %v1376_v53 = vadd.f32 %v1375_v42, %v1371_v37  ;;  %v1388_v54 = vadd.f32 %v1387_v43, %v1373_v38 }
 0x2b4   :  { %v1382_v55 = vadd.f32 %v1381_v47, %v1372_v39  ;;  %v1394_v56 = vadd.f32 %v1393_v48, %v1374_v40 }
 0x2b5   :  { %v1377_v57 = vrot.slane %v1376_v53, 2  ;;  %v1389_v58 = vrot.slane %v1388_v54, 2 }
 0x2b6   :  { %v1383_v59 = vrot.slane %v1382_v55, 2  ;;  %v1395_v60 = vrot.slane %v1394_v56, 2 }
 0x2b7   :  { %v1378_v61 = vadd.f32 %v1377_v57, %v1376_v53  ;;  %v1390_v62 = vadd.f32 %v1389_v58, %v1388_v54 }
 0x2b8   :  { %v1384_v63 = vadd.f32 %v1383_v59, %v1382_v55  ;;  %v1396_v0 = vadd.f32 %v1395_v60, %v1394_v56 }
 0x2b9   :  { %v1379_v1 = vrot.slane %v1378_v61, 1  ;;  %v1391_v2 = vrot.slane %v1390_v62, 1 }
 0x2ba   :  { %v1385_v4 = vrot.slane %v1384_v63, 1  ;;  %v1397_v5 = vrot.slane %v1396_v0, 1 }
 0x2bb   :  { %v1380_v6 = vadd.f32 %v1379_v1, %v1378_v61  ;;  %v1392_v7 = vadd.f32 %v1391_v2, %v1390_v62 }
 0x2bc   :  { %v1386_v8 = vadd.f32 %v1385_v4, %v1384_v63  ;;  %v1398_v52 = vadd.f32 %v1397_v5, %v1396_v0  ;;  %v94_v5 = vld [vmem:[#allocation10 + $0x4] ss:$0 sm:$0xff] }
 0x2bd   :  { %v1399_v9 = vmul.f32 0.125, %v1380_v6  ;;  %v1401_v51 = vmul.f32 0.125, %v1392_v7 }
 0x2be   :  { %v1400_v49 = vmul.f32 0.125, %v1386_v8  ;;  %v1402_v50 = vmul.f32 0.125, %v1398_v52 }
 0x2bf   :  { %v1403_v10 = vadd.f32 1e-05, %v1399_v9  ;;  %v1405_v11 = vadd.f32 1e-05, %v1401_v51 }
 0x2c0   :  { %v1404_v12 = vadd.f32 1e-05, %v1400_v49  ;;  %v1406_v13 = vadd.f32 1e-05, %v1402_v50 }
 0x2c1   :  { %2363 = vrsqrt.f32 %v1403_v10 }
 0x2c2   :  { %2365 = vrsqrt.f32 %v1405_v11 }
 0x2c3   :  { %2367 = vrsqrt.f32 %v1404_v12 }
 0x2c4   :  { %2369 = vrsqrt.f32 %v1406_v13 }
 0x2cb   :  { %v2364_v14 = vpop.eup %2363 }
 0x2cc   :  { %v2366_v15 = vpop.eup %2365 }
 0x2cd   :  { %v2368_v16 = vpop.eup %2367 }
 0x2ce   :  { %v2370_v17 = vpop.eup %2369  ;;  %v1415_v18 = vcombine.low %v2364_v14, %v2368_v16 }
 0x2cf   :  { %v1416_v19 = vcombine.low %v2366_v15, %v2370_v17 }
 0x2d0   :  { %v1423_v20 = vrot.slane %v1415_v18, %v2650_v32 }
 0x2d1   :  { %v1430_v21 = vrot.slane %v1416_v19, %v2650_v32 }
 0x2d3   :  { %v1431_v22 = vcombine.low %v1423_v20, %v1430_v21 }
 0x2d5   :  { %v1438_v25 = vrot.slane %v1431_v22, %v2650_v32 }
 0x2d7   :  { %v1440_v26 = vmul.f32 %v1438_v25, %v91_v23 }
 0x2d9   :  { %v1457_v31 = vrot.slane %v1440_v26, %v2654_v41  ;;  %v1449_v3 = vrot.slane %v1440_v26, %v2657_v44  ;;  %v1445_v37 = vrot.slane %v1440_v26, %v2659_v45  ;;  %v1453_v38 = vrot.slane %v1440_v26, %v2661_v46 }
 0x2db   :  { %v1465_v39 = vmul.f32 %v1457_v31, %v1370_v36  ;;  %v1463_v32 = vmul.f32 %v1449_v3, %v2684_v35  ;;  %v1462_v40 = vmul.f32 %v1445_v37, %v2680_v33  ;;  %v1464_v42 = vmul.f32 %v1453_v38, %v2682_v34 }
 0x2dd   :  { %v1490_v43 = vadd.f32 %v1482_v27, %v1465_v39  ;;  %v1488_v47 = vadd.f32 %v1474_v28, %v1463_v32  ;;  %v1487_v48 = vadd.f32 %v1470_v29, %v1462_v40  ;;  %v1489_v53 = vadd.f32 %v1478_v30, %v1464_v42 }
 0x2df   :  { %v1497_v54 = vmul.f32 1.442695, %v1488_v47  ;;  %v1501_v55 = vmul.f32 1.442695, %v1490_v43  ;;  %v1495_v41 = vmul.f32 1.442695, %v1487_v48 }
 0x2e0   :  { %v1499_v56 = vmul.f32 1.442695, %v1489_v53  ;;  %vm1492_vm5 = vcmp.gt.f32.partialorder %v1488_v47, 0.0  ;;  %vm1494_vm6 = vcmp.gt.f32.partialorder %v1490_v43, 0.0  ;;  %vm1491_vm7 = vcmp.gt.f32.partialorder %v1487_v48, 0.0 }
 0x2e1   :  { %2371 = vpow2.f32 %v1497_v54  ;;  %vm1493_vm8 = vcmp.gt.f32.partialorder %v1489_v53, 0.0 }
 0x2e2   :  { %2373 = vpow2.f32 %v1501_v55 }
 0x2e3   :  { %2375 = vpow2.f32 %v1495_v41 }
 0x2e4   :  { %2377 = vpow2.f32 %v1499_v56 }
 0x2eb   :  { %v2372_v44 = vpop.eup %2371 }
 0x2ec   :  { %v2374_v45 = vpop.eup %2373  ;;  %v2012_v46 = vadd.f32 -1.0, %v2372_v44 }
 0x2ed   :  { %v2376_v35 = vpop.eup %2375  ;;  %v2014_v33 = vadd.f32 -1.0, %v2374_v45 }
 0x2ee   :  { %v2378_v36 = vpop.eup %2377  ;;  %v1508_v34 = vsel %vm1492_vm5, %v1488_v47, %v2012_v46  ;;  %v2011_v57 = vadd.f32 -1.0, %v2376_v35 }
 0x2ef   :  { %v1512_v58 = vpack.c.bf16 %v1508_v34, %v1508_v34  ;;  %v1510_v59 = vsel %vm1494_vm6, %v1490_v43, %v2014_v33  ;;  %v2013_v60 = vadd.f32 -1.0, %v2378_v36 }
 0x2f0   :  { %v1514_v61 = vpack.c.bf16 %v1510_v59, %v1510_v59  ;;  %v1507_v62 = vsel %vm1491_vm7, %v1487_v48, %v2011_v57 }
 0x2f1   :  { %1803 = vmatprep.mubr.bf16.mxu0 %v1512_v58  ;;  %v1511_v63 = vpack.c.bf16 %v1507_v62, %v1507_v62  ;;  %v1509_v0 = vsel %vm1493_vm8, %v1489_v53, %v2013_v60 }
 0x2f2   :  { %1843 = vmatprep.mubr.bf16.mxu1 %v1514_v61  ;;  %v1513_v1 = vpack.c.bf16 %v1509_v0, %v1509_v0 }
 0x2f3   :  { %1804 = vmatmul.mubr.bf16.vlgmr.msra.gmra.mrb[8].mxu0 %v1511_v63 }
 0x2f4   :  { %1844 = vmatmul.mubr.bf16.vlgmr.msra.gmra.mrb[8].mxu1 %v1513_v1 }
 0x3c6   :  { %v2063_v2 = vpop.f32.mrb[8].mxu0 }
 0x3c7   :  { %v2085_v4 = vpop.f32.mrb[8].mxu1  ;;  %v2064_v6 = vpop.f32.mrb[9].mxu0 }
 0x3c8   :  { %v2065_v7 = vadd.f32 %v2064_v6, %v2063_v2  ;;  %v2086_v8 = vpop.f32.mrb[9].mxu1  ;;  %v2066_v52 = vpop.f32.mrb[10].mxu0 }
 0x3c9   :  { %v2087_v9 = vadd.f32 %v2086_v8, %v2085_v4  ;;  %v2088_v51 = vpop.f32.mrb[10].mxu1  ;;  %v2067_v49 = vpop.f32.mrb[11].mxu0 }
 0x3ca   :  { %v1806_v50 = vadd.f32 %v2065_v7, %v94_v5  ;;  %v2089_v10 = vpop.f32.mrb[11].mxu1 }
 0x3cc   :  { %v1846_v11 = vadd.f32 %v2087_v9, %v1806_v50 }
 0x3ce   :  { %1851 = vst [vmem:[#allocation11] sm:$0xff] %v1846_v11 }
 0x3cf   :  { %2500 = shalt.err (!%p2497_p2)
}
 0x3d0   :  { %s2501_s3 = scalar_lea.hbm %s2723_s5, 128 }
 0x3d1   :  { %p2502_p3 = scmp.ne.s32.totalorder %s2723_s5, %s2501_s3  ;;  %p2505_p4 = scmp.lt.u32.totalorder %s2501_s3, %s2723_s5 }
 0x3d3   :  { %p2507_p5 = pnand %p2505_p4, %p2502_p3 }
 0x3d5   :  { %2510 = shalt.err (!%p2507_p5)
}
 0x3d6   :  { %1861 = dma.vmem_to_hbm [thread:$0]  %s1859_s29, 128, %s2723_s5, [#allocation4]  }
 0x3d7   :  { %2517 = dma.done.wait [#allocation4], 128  }
 0x3d8   :  { %2518 = vsyncadd [#allocation4], 4294967168 }
 0x3d9   :  { %1865 = vsyncpa [#allocation3], 1 }
 0x3da   :  { %1866 = vsyncpa [#allocation6], 1 }
 0x3db   :  { %1867 = vsyncpa [#allocation9], 1 }
 0x3dc   :  { %1868 = vsyncpa [#allocation4], 1 }

</bundles_post_ra>
